<compile_context>
chip_gen: v5e
topology: v5e:2x2
jax: 0.10.0
libtpu: 0.0.40
codegen_flags: <defaults>
</compile_context>

<pallas_src>
import functools

import jax
import jax.numpy as jnp
from jax import lax
from jax.experimental import pallas as pl
from jax.experimental.pallas import tpu as pltpu


_BN_EPS = 1e-5
_TILE_CANDIDATES = (256, 128, 64, 32, 16, 8)


def _device_defaults():
    """Per-generation (row cap, key cap, vmem limit, min row blocks)."""
    kind = ""
    try:
        kind = jax.devices()[0].device_kind.lower()
    except Exception:
        pass
    if "v7" in kind:
        # 2 TensorCores per chip: keep >=2 "parallel" row blocks, and leave
        # headroom below the 64 MiB per-TC physical VMEM.
        return 256, 256, 48 * 1024 * 1024, 2
    if "v6" in kind:
        return 256, 256, 96 * 1024 * 1024, 1
    if "v5" in kind and ("lite" in kind or "v5e" in kind):
        # v5e: 128-wide MXU, most HBM-bound generation.
        return 128, 128, 64 * 1024 * 1024, 1
    if "v5" in kind:  # v5p
        return 256, 256, 96 * 1024 * 1024, 1
    # v2/v3/v4/unknown: conservative tiles, keep the compiler's default limit.
    return 128, 128, None, 1


_ROW_CAP, _KEY_CAP, _VMEM_LIMIT, _MIN_ROW_BLOCKS = _device_defaults()


def _pick_tile(n, cap, min_blocks=1):
    for t in _TILE_CANDIDATES:
        if t <= cap and n % t == 0 and n // t >= min_blocks:
            return t
    for t in _TILE_CANDIDATES:
        if t <= cap and n % t == 0:
            return t
    raise ValueError(
        f"node count {n} must be a multiple of 8 "
        "(TODO(synk): pad ragged node counts)")


def _row_tile(n):
    return _pick_tile(n, _ROW_CAP, _MIN_ROW_BLOCKS)


def _key_tile(n):
    return _pick_tile(n, _KEY_CAP)


def _cparams(*sem):
    kw = dict(dimension_semantics=sem)
    if _VMEM_LIMIT is not None:
        kw["vmem_limit_bytes"] = _VMEM_LIMIT
    return pltpu.CompilerParams(**kw)


def _smem_spec():
    # (1,1) scalar parameters live in SMEM, not a padded VMEM tile.
    return pl.BlockSpec(memory_space=pltpu.MemorySpace.SMEM)


def _l2_normalize(v, eps=1e-12):
    # F.normalize(dim=-1, p=2): v / max(||v||, eps); computed in f32.
    ssq = jnp.sum(v * v, axis=-1, keepdims=True)
    return v * lax.rsqrt(jnp.maximum(ssq, eps * eps))


# ----------------------------------------------------------------------------
# Kernels
# ----------------------------------------------------------------------------

def _linear_kernel(x_ref, w_ref, o_ref):
    """o = x @ w (bf16 operands, f32 MXU accumulate)."""
    x = x_ref[...].astype(jnp.bfloat16)
    o_ref[...] = jnp.dot(x, w_ref[...],
                         preferred_element_type=jnp.float32).astype(o_ref.dtype)


def _gcn_proj1_kernel(adj_ref, xw_ref, w1_ref, b1_ref, a_ref,
                      h_ref, sum_ref, sq_ref, acc_ref, *, xw_resident, tk):
    """Fused: reps = PReLU(adj @ xw); h = reps @ W1 + b1; BN partial stats.

    Grid = (row tiles, adjacency-column tiles). `xw` is VMEM-resident
    (single DMA, sliced with pl.ds) unless `xw_resident` is False.
    """
    k = pl.program_id(1)

    @pl.when(k == 0)
    def _():
        acc_ref[...] = jnp.zeros_like(acc_ref)

    if xw_resident:
        start = pl.multiple_of(k * tk, tk)
        xw = xw_ref[pl.ds(start, tk), :]
    else:
        xw = xw_ref[...]
    adj = adj_ref[...].astype(jnp.bfloat16)
    acc_ref[...] += jnp.dot(adj, xw.astype(jnp.bfloat16),
                            preferred_element_type=jnp.float32)

    @pl.when(k == pl.num_programs(1) - 1)
    def _():
        a = a_ref[0, 0]
        reps = acc_ref[...]
        reps = jnp.where(reps > 0.0, reps, a * reps)        # gnn PReLU
        h = jnp.dot(reps.astype(jnp.bfloat16), w1_ref[...],
                    preferred_element_type=jnp.float32) + b1_ref[...]
        h_ref[...] = h.astype(h_ref.dtype)
        sum_ref[...] = jnp.sum(h, axis=0, keepdims=True)[None]
        sq_ref[...] = jnp.sum(h * h, axis=0, keepdims=True)[None]


def _linear_stats_kernel(x_ref, w_ref, b_ref, h_ref, sum_ref, sq_ref):
    """h = x @ W1 + b1 with per-tile BN partial sums (MLP first pass)."""
    x = x_ref[...].astype(jnp.bfloat16)
    h = jnp.dot(x, w_ref[...], preferred_element_type=jnp.float32) + b_ref[...]
    h_ref[...] = h.astype(h_ref.dtype)
    sum_ref[...] = jnp.sum(h, axis=0, keepdims=True)[None]
    sq_ref[...] = jnp.sum(h * h, axis=0, keepdims=True)[None]


def _logmap_linear_stats_kernel(p_ref, c_ref, w_ref, b_ref,
                                eudn_ref, h_ref, sum_ref, sq_ref):
    """PoincareBall logmap0 (proj_tan0 = id) fused into the predictor pass 1.

    Also emits an L2-normalized bf16 copy of the tangent vectors (used as
    target_proj_two by the contrastive kernel)."""
    p = p_ref[...]
    c = c_ref[0, 0]
    sqrt_c = jnp.sqrt(c)
    pn = jnp.maximum(jnp.sqrt(jnp.sum(p * p, axis=-1, keepdims=True)), 1e-15)
    xarg = jnp.clip(sqrt_c * pn, -1.0 + 1e-7, 1.0 - 1e-7)
    artanh = 0.5 * jnp.log((1.0 + xarg) / (1.0 - xarg))
    eud = (artanh / (sqrt_c * pn)) * p
    eudn_ref[...] = _l2_normalize(eud).astype(eudn_ref.dtype)

    h = jnp.dot(eud.astype(jnp.bfloat16), w_ref[...],
                preferred_element_type=jnp.float32) + b_ref[...]
    h_ref[...] = h.astype(h_ref.dtype)
    sum_ref[...] = jnp.sum(h, axis=0, keepdims=True)[None]
    sq_ref[...] = jnp.sum(h * h, axis=0, keepdims=True)[None]


def _bn_act_linear_kernel(h_ref, scale_ref, shift_ref, a_ref, w2_ref, b2_ref,
                          o_ref, on_ref):
    """MLP second pass: BN affine (precomputed scale/shift) -> PReLU -> Linear.

    Emits the layer output (bf16) plus an L2-normalized bf16 copy so the
    contrastive kernel never has to re-normalize its operands."""
    hn = h_ref[...].astype(jnp.float32) * scale_ref[...] + shift_ref[...]
    a = a_ref[0, 0]
    hp = jnp.where(hn > 0.0, hn, a * hn)
    o = jnp.dot(hp.astype(jnp.bfloat16), w2_ref[...],
                preferred_element_type=jnp.float32) + b2_ref[...]
    o_ref[...] = o.astype(o_ref.dtype)
    on_ref[...] = _l2_normalize(o).astype(on_ref.dtype)


def _contrastive_kernel(p1q_ref, p2q_ref, zq_ref, gq_ref,
                        p1k_ref, p2k_ref, zk_ref, gk_ref,
                        beta_ref, loss_ref,
                        den1_ref, cross1_ref, den2_ref, cross2_ref):
    """Both contrastive losses fused; all operands are pre-normalized bf16.

    l1 = beta*Lnet(pred1,pred2) + (1-beta)*Lview(pred1, eud)
    l2 = beta*Lnet(pred2,pred1) + (1-beta)*Lview(pred2, proj)
    Output: per-row 0.5*(l1+l2). Diagonals via row-wise dots (no NxN masks).
    """
    ki = pl.program_id(1)

    @pl.when(ki == 0)
    def _():
        den1_ref[...] = jnp.zeros_like(den1_ref)
        cross1_ref[...] = jnp.zeros_like(cross1_ref)
        den2_ref[...] = jnp.zeros_like(den2_ref)
        cross2_ref[...] = jnp.zeros_like(cross2_ref)

    a1q = p1q_ref[...]
    a2q = p2q_ref[...]
    a1k = p1k_ref[...]
    a2k = p2k_ref[...]

    def row_sum_exp(q, k):
        # q @ k.T expressed directly as dot_general (no materialized transpose).
        s = lax.dot_general(q, k, (((1,), (1,)), ((), ())),
                            preferred_element_type=jnp.float32)
        return jnp.sum(jnp.exp(s), axis=-1, keepdims=True)

    den1_ref[...] += row_sum_exp(a1q, a1k) + row_sum_exp(a1q, a2k)
    cross1_ref[...] += row_sum_exp(a1q, zk_ref[...])
    den2_ref[...] += row_sum_exp(a2q, a2k) + row_sum_exp(a2q, a1k)
    cross2_ref[...] += row_sum_exp(a2q, gk_ref[...])

    @pl.when(ki == pl.num_programs(1) - 1)
    def _():
        beta = beta_ref[0, 0]
        a1f = a1q.astype(jnp.float32)
        a2f = a2q.astype(jnp.float32)
        zqf = zq_ref[...].astype(jnp.float32)
        gqf = gq_ref[...].astype(jnp.float32)
        rdot = lambda u, v: jnp.sum(u * v, axis=-1, keepdims=True)
        d_inter = jnp.exp(rdot(a1f, a2f))      # diag of both inter grams
        d_intra1 = jnp.exp(rdot(a1f, a1f))
        d_intra2 = jnp.exp(rdot(a2f, a2f))
        d_cross1 = jnp.exp(rdot(a1f, zqf))
        d_cross2 = jnp.exp(rdot(a2f, gqf))
        l1 = (-beta * jnp.log(d_inter / (den1_ref[...] - d_intra1))
              - (1.0 - beta) * jnp.log(d_cross1 / cross1_ref[...]))
        l2 = (-beta * jnp.log(d_inter / (den2_ref[...] - d_intra2))
              - (1.0 - beta) * jnp.log(d_cross2 / cross2_ref[...]))
        loss_ref[...] = 0.5 * (l1 + l2)


# ----------------------------------------------------------------------------
# pallas_call wrappers
# ----------------------------------------------------------------------------

def linear_rows(x, w, out_dtype=jnp.bfloat16):
    """Row-tiled o = x @ w (gnn feature transform)."""
    n, d_in = x.shape
    d_out = w.shape[1]
    tm = _row_tile(n)
    return pl.pallas_call(
        _linear_kernel,
        out_shape=jax.ShapeDtypeStruct((n, d_out), out_dtype),
        grid=(n // tm,),
        in_specs=[pl.BlockSpec((tm, d_in), lambda i: (i, 0)),
                  pl.BlockSpec((d_in, d_out), lambda i: (0, 0))],
        out_specs=pl.BlockSpec((tm, d_out), lambda i: (i, 0)),
        compiler_params=_cparams("parallel"),
    )(x, w)


def gcn_proj_first(adj, xw, w1, b1, a_prelu):
    """Fused adj@xw -> PReLU -> projector Linear1 (+ BN partial stats)."""
    n = adj.shape[0]
    d_mid = xw.shape[1]
    hdim = w1.shape[1]
    tm = _row_tile(n)
    tk = _key_tile(n)
    nq = n // tm

    # Keep xw resident in VMEM (single DMA) unless it would crowd VMEM
    # (2x for double buffering); otherwise stream one (tk, d_mid) slab/step.
    budget = (_VMEM_LIMIT or 32 * 1024 * 1024) // 3
    xw_resident = 2 * n * d_mid * xw.dtype.itemsize <= budget
    if xw_resident:
        xw_spec = pl.BlockSpec((n, d_mid), lambda i, k: (0, 0))
    else:
        xw_spec = pl.BlockSpec((tk, d_mid), lambda i, k: (k, 0))

    kernel = functools.partial(_gcn_proj1_kernel,
                               xw_resident=xw_resident, tk=tk)
    return pl.pallas_call(
        kernel,
        out_shape=(jax.ShapeDtypeStruct((n, hdim), jnp.bfloat16),
                   jax.ShapeDtypeStruct((nq, 1, hdim), jnp.float32),
                   jax.ShapeDtypeStruct((nq, 1, hdim), jnp.float32)),
        grid=(nq, n // tk),
        in_specs=[pl.BlockSpec((tm, tk), lambda i, k: (i, k)),
                  xw_spec,
                  pl.BlockSpec((d_mid, hdim), lambda i, k: (0, 0)),
                  pl.BlockSpec((1, hdim), lambda i, k: (0, 0)),
                  _smem_spec()],
        out_specs=(pl.BlockSpec((tm, hdim), lambda i, k: (i, 0)),
                   pl.BlockSpec((1, 1, hdim), lambda i, k: (i, 0, 0)),
                   pl.BlockSpec((1, 1, hdim), lambda i, k: (i, 0, 0))),
        scratch_shapes=[pltpu.VMEM((tm, d_mid), jnp.float32)],
        compiler_params=_cparams("parallel", "arbitrary"),
    )(adj, xw, w1, b1, a_prelu)


def linear_stats(x, w1, b1):
    n, d_in = x.shape
    hdim = w1.shape[1]
    tm = _row_tile(n)
    nq = n // tm
    return pl.pallas_call(
        _linear_stats_kernel,
        out_shape=(jax.ShapeDtypeStruct((n, hdim), jnp.bfloat16),
                   jax.ShapeDtypeStruct((nq, 1, hdim), jnp.float32),
                   jax.ShapeDtypeStruct((nq, 1, hdim), jnp.float32)),
        grid=(nq,),
        in_specs=[pl.BlockSpec((tm, d_in), lambda i: (i, 0)),
                  pl.BlockSpec((d_in, hdim), lambda i: (0, 0)),
                  pl.BlockSpec((1, hdim), lambda i: (0, 0))],
        out_specs=(pl.BlockSpec((tm, hdim), lambda i: (i, 0)),
                   pl.BlockSpec((1, 1, hdim), lambda i: (i, 0, 0)),
                   pl.BlockSpec((1, 1, hdim), lambda i: (i, 0, 0))),
        compiler_params=_cparams("parallel"),
    )(x, w1, b1)


def logmap_linear_stats(p, c, w1, b1):
    n, d_in = p.shape
    hdim = w1.shape[1]
    tm = _row_tile(n)
    nq = n // tm
    return pl.pallas_call(
        _logmap_linear_stats_kernel,
        out_shape=(jax.ShapeDtypeStruct((n, d_in), jnp.bfloat16),   # normalized eud
                   jax.ShapeDtypeStruct((n, hdim), jnp.bfloat16),
                   jax.ShapeDtypeStruct((nq, 1, hdim), jnp.float32),
                   jax.ShapeDtypeStruct((nq, 1, hdim), jnp.float32)),
        grid=(nq,),
        in_specs=[pl.BlockSpec((tm, d_in), lambda i: (i, 0)),
                  _smem_spec(),
                  pl.BlockSpec((d_in, hdim), lambda i: (0, 0)),
                  pl.BlockSpec((1, hdim), lambda i: (0, 0))],
        out_specs=(pl.BlockSpec((tm, d_in), lambda i: (i, 0)),
                   pl.BlockSpec((tm, hdim), lambda i: (i, 0)),
                   pl.BlockSpec((1, 1, hdim), lambda i: (i, 0, 0)),
                   pl.BlockSpec((1, 1, hdim), lambda i: (i, 0, 0))),
        compiler_params=_cparams("parallel"),
    )(p, c, w1, b1)


def bn_act_linear(h, scale, shift, a_prelu, w2, b2):
    n, hdim = h.shape
    d_out = w2.shape[1]
    tm = _row_tile(n)
    return pl.pallas_call(
        _bn_act_linear_kernel,
        out_shape=(jax.ShapeDtypeStruct((n, d_out), jnp.bfloat16),
                   jax.ShapeDtypeStruct((n, d_out), jnp.bfloat16)),
        grid=(n // tm,),
        in_specs=[pl.BlockSpec((tm, hdim), lambda i: (i, 0)),
                  pl.BlockSpec((1, hdim), lambda i: (0, 0)),
                  pl.BlockSpec((1, hdim), lambda i: (0, 0)),
                  _smem_spec(),
                  pl.BlockSpec((hdim, d_out), lambda i: (0, 0)),
                  pl.BlockSpec((1, d_out), lambda i: (0, 0))],
        out_specs=(pl.BlockSpec((tm, d_out), lambda i: (i, 0)),
                   pl.BlockSpec((tm, d_out), lambda i: (i, 0))),
        compiler_params=_cparams("parallel"),
    )(h, scale, shift, a_prelu, w2, b2)


def contrastive_pair(pred1n, pred2n, eudn, projn, beta):
    """Per-row 0.5*(l1+l2); all inputs are L2-normalized bf16 (N, d)."""
    n, d = pred1n.shape
    tq = _row_tile(n)
    tk = _key_tile(n)
    q_spec = pl.BlockSpec((tq, d), lambda qi, ki: (qi, 0))
    k_spec = pl.BlockSpec((tk, d), lambda qi, ki: (ki, 0))
    return pl.pallas_call(
        _contrastive_kernel,
        out_shape=jax.ShapeDtypeStruct((n, 1), jnp.float32),
        grid=(n // tq, n // tk),
        in_specs=[q_spec, q_spec, q_spec, q_spec,
                  k_spec, k_spec, k_spec, k_spec,
                  _smem_spec()],
        out_specs=pl.BlockSpec((tq, 1), lambda qi, ki: (qi, 0)),
        scratch_shapes=[pltpu.VMEM((tq, 1), jnp.float32) for _ in range(4)],
        compiler_params=_cparams("parallel", "arbitrary"),
    )(pred1n, pred2n, eudn, projn, pred1n, pred2n, eudn, projn, beta)


def _bn_affine(sums, sqs, n, gamma, beta_bn, eps=_BN_EPS):
    """O(H) finalize of the BN two-pass: scale/shift from partial sums."""
    s = jnp.sum(sums[:, 0, :], axis=0)
    ss = jnp.sum(sqs[:, 0, :], axis=0)
    mean = s / n
    var = jnp.maximum(ss / n - mean * mean, 0.0)   # biased (training) variance
    rstd = lax.rsqrt(var + eps)
    scale = gamma * rstd
    shift = beta_bn - mean * scale
    return scale.reshape(1, -1), shift.reshape(1, -1)


# ----------------------------------------------------------------------------
# Parameters and model
# ----------------------------------------------------------------------------

def make_mlp_params(key, d_in, d_out, d_hidden):
    k1, k2 = jax.random.split(key)
    s1 = 1.0 / jnp.sqrt(jnp.float32(d_in))
    s2 = 1.0 / jnp.sqrt(jnp.float32(d_hidden))
    return {
        # Weights stored bf16 (MXU operands); biases / BN params stay f32.
        "w1": (s1 * jax.random.normal(k1, (d_in, d_hidden),
                                      jnp.float32)).astype(jnp.bfloat16),
        "b1": jnp.zeros((1, d_hidden), jnp.float32),
        "gamma": jnp.ones((d_hidden,), jnp.float32),
        "beta": jnp.zeros((d_hidden,), jnp.float32),
        "w2": (s2 * jax.random.normal(k2, (d_hidden, d_out),
                                      jnp.float32)).astype(jnp.bfloat16),
        "b2": jnp.zeros((1, d_out), jnp.float32),
        "a": jnp.full((1, 1), 0.25, jnp.float32),   # PReLU slope
    }


def mlp_second(h, sums, sqs, params):
    n = h.shape[0]
    scale, shift = _bn_affine(sums, sqs, n, params["gamma"], params["beta"])
    return bn_act_linear(h, scale, shift, params["a"], params["w2"],
                         params["b2"])


class HypMVIEWPallas:
    GNN_OUT = 512  # GraphEncoder.projector hard-codes MLP(512, ...)

    def __init__(self, key, feat_size, projection_size, projection_hidden_size,
                 prediction_size, prediction_hidden_size, beta, c,
                 tied_target=True):
        assert projection_size == prediction_size, \
            "sim() in the contrastive losses requires proj_size == pred_size"
        k_gnn, k_proj, k_pred = jax.random.split(key, 3)
        scale = 1.0 / jnp.sqrt(jnp.float32(feat_size))
        # TODO(synk): plug in the real external `gnn`; modeled as one dense
        # GCN layer PReLU(adj @ (X @ W)) with 512 outputs.
        self.gnn_w = (scale * jax.random.normal(
            k_gnn, (feat_size, self.GNN_OUT), jnp.float32)).astype(jnp.bfloat16)
        self.gnn_a = jnp.full((1, 1), 0.25, jnp.float32)
        self.projector = make_mlp_params(
            k_proj, self.GNN_OUT, projection_size, projection_hidden_size)
        self.predictor = make_mlp_params(
            k_pred, projection_size, prediction_size, prediction_hidden_size)
        # target_encoder1 = copy.deepcopy(online_encoder) -> identical params,
        # so tied_target=True skips the duplicate (no_grad) encode; set False
        # once an EMA update actually makes the target diverge.
        self.tied_target = tied_target
        self.target_gnn_w = self.gnn_w
        self.target_gnn_a = self.gnn_a
        self.target_projector = self.projector
        self.beta = jnp.full((1, 1), beta, jnp.float32)
        self.c = jnp.full((1, 1), c, jnp.float32)

    def _encode(self, adj_bf16, feat_bf16, gnn_w, gnn_a, projector):
        # gnn: X @ W, then fused (adj @ XW -> PReLU -> projector Linear1 + BN stats)
        xw = linear_rows(feat_bf16, gnn_w)                       # (N, 512) bf16
        h, sums, sqs = gcn_proj_first(adj_bf16, xw, projector["w1"],
                                      projector["b1"], gnn_a)
        return mlp_second(h, sums, sqs, projector)   # (proj bf16, proj_norm bf16)

    def forward(self, adj, aug_adj_1, aug_emb, feat, aug_feat_1, sparse=False):
        del adj, feat, sparse  # unused by the reference forward (dense path)
        # TODO(synk): sparse adjacency path.

        # Stream the large operands as bf16 (they feed the MXU anyway).
        adj_b = aug_adj_1.astype(jnp.bfloat16)
        feat_b = aug_feat_1.astype(jnp.bfloat16)

        online_proj_one, proj_one_norm = self._encode(
            adj_b, feat_b, self.gnn_w, self.gnn_a, self.projector)

        # Predictor on the projected graph view.
        h1, sm1, sq1 = linear_stats(online_proj_one, self.predictor["w1"],
                                    self.predictor["b1"])
        _, pred_one_norm = mlp_second(h1, sm1, sq1, self.predictor)

        # logmap0 (+ proj_tan0 == identity) fused into predictor pass 1;
        # also emits the normalized tangent vectors for the contrastive loss.
        eud_norm, h2, sm2, sq2 = logmap_linear_stats(
            aug_emb, self.c, self.predictor["w1"], self.predictor["b1"])
        _, pred_two_norm = mlp_second(h2, sm2, sq2, self.predictor)

        # with torch.no_grad(): target branches.
        if self.tied_target:
            target_one_norm = proj_one_norm   # deepcopy at init -> identical
        else:
            _, target_one_norm = self._encode(
                adj_b, feat_b, self.target_gnn_w, self.target_gnn_a,
                self.target_projector)
        target_two_norm = eud_norm

        per_row = contrastive_pair(pred_one_norm, pred_two_norm,
                                   target_two_norm, target_one_norm, self.beta)
        return jnp.mean(per_row)


# ----------------------------------------------------------------------------
# Example run
# ----------------------------------------------------------------------------

if __name__ == "__main__":
    N = 256          # nodes (multiple of every tile size used)
    FEAT = 128       # input feature dim
    PROJ = 128       # projection_size
    PROJ_HID = 256   # projection_hidden_size
    PRED = 128       # prediction_size (must equal PROJ)
    PRED_HID = 256   # prediction_hidden_size
    BETA = 0.6
    C = 1.0

    root = jax.random.PRNGKey(0)
    k_param, k_adj, k_feat, k_emb = jax.random.split(root, 4)

    model = HypMVIEWPallas(k_param, FEAT, PROJ, PROJ_HID, PRED, PRED_HID,
                           beta=BETA, c=C)

    # Row-normalized random adjacency with self-loops.
    raw = jnp.abs(jax.random.normal(k_adj, (N, N), dtype=jnp.float32))
    raw = raw + jnp.eye(N, dtype=jnp.float32)
    aug_adj_1 = raw / jnp.sum(raw, axis=-1, keepdims=True)
    adj = aug_adj_1                                   # unused by forward

    aug_feat_1 = jax.random.normal(k_feat, (N, FEAT), dtype=jnp.float32)
    feat = aug_feat_1                                 # unused by forward

    # Hyperbolic embedding: points strictly inside the Poincare ball (c=1).
    emb = jax.random.normal(k_emb, (N, PROJ), dtype=jnp.float32)
    emb_norm = jnp.sqrt(jnp.sum(emb * emb, axis=-1, keepdims=True))
    aug_emb = 0.5 * emb / jnp.maximum(emb_norm, 1e-12)

    loss = model.forward(adj, aug_adj_1, aug_emb, feat, aug_feat_1,
                         sparse=False)
    loss = jax.block_until_ready(loss)
    assert jnp.isfinite(loss), f"non-finite loss: {loss}"
    print("KERNEL_OK")
</pallas_src>

<mosaic_0001>
module attributes {stable_mosaic.version = 11 : i64} {
  func.func @_linear_kernel(%arg0: i32, %arg1: memref<128x128xbf16, #tpu.memory_space<vmem>>, %arg2: memref<128x512xbf16, #tpu.memory_space<vmem>>, %arg3: memref<128x512xbf16, #tpu.memory_space<vmem>>) attributes {dimension_semantics = [#tpu.dimension_semantics<parallel>], iteration_bounds = array<i64: 2>, scalar_prefetch = 0 : i64, scratch_operands = 0 : i64, tpu.core_type = #tpu.core_type<tc>, window_params = [{transform_indices = @transform_0, window_bounds = array<i64: 128, 128>}, {pipeline_mode = #tpu.pipeline_mode<synchronous>, transform_indices = @transform_1, window_bounds = array<i64: 128, 512>}, {transform_indices = @transform_2, window_bounds = array<i64: 128, 512>}]} {
    %c0 = arith.constant 0 : index
    %c0_0 = arith.constant 0 : index
    %0 = vector.load %arg1[%c0, %c0_0] : memref<128x128xbf16, #tpu.memory_space<vmem>>, vector<128x128xbf16>
    %c0_1 = arith.constant 0 : index
    %c0_2 = arith.constant 0 : index
    %1 = vector.load %arg2[%c0_1, %c0_2] : memref<128x512xbf16, #tpu.memory_space<vmem>>, vector<128x512xbf16>
    %cst = arith.constant dense<0.000000e+00> : vector<128x512xf32>
    %2 = tpu.matmul %0, %1, %cst {dimension_numbers = #tpu.dot_dimension_numbers<[1], [0], [0], [1], [0, 0, 1, 1], [], []>} : vector<128x128xbf16>, vector<128x512xbf16>, vector<128x512xf32> -> vector<128x512xf32>
    %3 = arith.truncf %2 : vector<128x512xf32> to vector<128x512xbf16>
    %c0_3 = arith.constant 0 : index
    %c0_4 = arith.constant 0 : index
    %4 = vector.load %arg3[%c0_3, %c0_4] : memref<128x512xbf16, #tpu.memory_space<vmem>>, vector<128x512xbf16>
    tpu.vector_store %arg3[%c0_3, %c0_4], %3 {strides = array<i32>} : memref<128x512xbf16, #tpu.memory_space<vmem>>, vector<128x512xbf16>,
    return
  }
  func.func @transform_0(%arg0: i32) -> (i32, i32) {
    %c0_i32 = arith.constant 0 : i32
    %c0_i32_0 = arith.constant 0 : i32
    return %arg0, %c0_i32 : i32, i32
  }
  func.func @transform_1(%arg0: i32) -> (i32, i32) {
    %c0_i32 = arith.constant 0 : i32
    %c0_i32_0 = arith.constant 0 : i32
    %c0_i32_1 = arith.constant 0 : i32
    return %c0_i32, %c0_i32_0 : i32, i32
  }
  func.func @transform_2(%arg0: i32) -> (i32, i32) {
    %c0_i32 = arith.constant 0 : i32
    %c0_i32_0 = arith.constant 0 : i32
    return %arg0, %c0_i32 : i32, i32
  }
}

</mosaic_0001>

<bundles_post_ra>
// kernel: tpu_custom_call.1
= control target key start
LH: loop header
LB: loop body
LE: loop exit
PB: predicated region body
PF: predicated region fallthrough
CT: control target
= control target key end

     0   :  { %7 = vsyncpa [#allocation3], 0  ;;  %s1422_s0 = inlined_call_operand.hbm [shape: bf16[256,128], index: 0, kind: input, shape index: {}]   ;;  %s1423_s1 = inlined_call_operand.hbm [shape: bf16[128,512], index: 1, kind: input, shape index: {}]   ;;  %s1424_s2 = inlined_call_operand.hbm [shape: bf16[256,512], index: 2, kind: output, shape index: {}]  }
   0x1   :  { %9 = vsyncpa [#allocation3 + $0x1], 0 }
   0x2   :  { %10 = vsyncpa [#allocation6], 0 }
   0x3   :  { %11 = vsyncpa [#allocation4], 0 }
   0x4   :  { %13 = vsyncpa [#allocation4 + $0x1], 0  ;;  %s1236_s9 = smov 0   ;;  %s1238_s10 = smov 0  }
   0x5   :  { %s1240_s11 = smov 0   ;;  %s1242_s12 = smov 0  }
   0x6 LB: > { %s1257_s13 = sadd.s32 4294967295, %s1212_s12   ;;  %s799_s14 = sadd.s32 4294967294, %s1212_s12   ;;  %s1212_s12 = sphi %s1242_s12, %s1434_s12   ;;  %s1208_s11 = sphi %s1240_s11, %s1433_s11   ;;  %s1204_s10 = sphi %s1238_s10, %s1432_s10   ;;  %s1200_s9 = sphi %s1236_s9, %s1431_s9  }
   0x7   : > { %p39_p0 = scmp.ne.s32.totalorder %s1204_s10, %s1200_s9  ;;  %p40_p1 = scmp.eq.s32.totalorder %s1257_s13, 0 }
   0x8   : > { %p84_p2 = scmp.eq.s32.totalorder %s1257_s13, 1  ;;  %p90_p3 = scmp.eq.s32.totalorder %s799_s14, 1 }
   0x9   : > { %p1266_p4 = por %p40_p1, %p39_p0  ;;  %p800_p5 = scmp.ge.s32.totalorder %s1212_s12, 1 }
   0xa   : > { %p1271_p6 = por %p90_p3, %p39_p0  ;;  %p97_p7 = scmp.lt.s32.totalorder %s1212_s12, 3 }
   0xb   : > { %s108_s19 = sshll.u32 %s1423_s1, 4  ;;  %s1214_s21 = smov [#allocation5]   ;;  %s109_s19 = int_to_ptr.hbm [resolvable:$true] %s108_s19 }
   0xc   : > { %p1279_p8 = pnand %p800_p5, %p97_p7  ;;  %s110_s22 = sshll.u32 %s1214_s21, 4  ;;  %s111_s22 = int_to_ptr.vmem [resolvable:$true] %s110_s22 }
   0xd   : > { %s1289_s23 = sadd.s32 1, %s1212_s12   ;;  %s1215_s24 = smov 256  }
   0xe   : > { %p1027_p9 = pneg %p1279_p8  ;;  %s1216_s25 = smov 16  }
   0xf   : > { %s23_s26 = ssub.s32 %s1212_s12, %s1289_s23  ;;  %s26_s27 = sadd.s32 1, %s1208_s11 }
  0x10   : > { %p1028_p10 = pnand %p1027_p9, %p40_p1  ;;  %p24_p12 = scmp.eq.s32.totalorder %s23_s26, 0 }
  0x11   : > { %p33_p13 = scmp.ne.s32.totalorder %s1208_s11, %s1204_s10  ;;  %p34_p0 = scmp.eq.s32.totalorder %s1212_s12, 0 }
  0x12   : > { %1030 = dma.hbm_to_vmem [thread:$0]  (!%p1028_p10), %s109_s19, 4096, %s111_s22, [#allocation6], %s1215_s24, %s1215_s24, %s1216_s25  }
  0x13   : > { %p1040_p3 = scmp.lt.s32.totalorder %s1212_s12, 2  ;;  %p35_p5 = por %p34_p0, %p33_p13 }
  0x14   : > { %s1299_s28 = scalar_select %p24_p12, %s1208_s11, %s26_s27  }
  0x15   : > { %p1303_p7 = por %p84_p2, %p33_p13  ;;  %s124_s30 = sand.u32 1, %s1208_s11  }
  0x16   : > { %s976_s3 = sshll.u32 %s1212_s12, 6  ;;  %s803_s4 = sshll.u32 %s124_s30, 6 }
  0x17   : > { %s133_s7 = scalar_lea.hbm %s1422_s0, %s976_s3  ;;  %s128_s14 = scalar_lea.vmem [#allocation2], %s803_s4 }
  0x18   : > { %s134_s8 = sshll.u32 %s133_s7, 4  ;;  %s136_s17 = sshll.u32 %s128_s14, 4  ;;  %s135_s8 = int_to_ptr.hbm [resolvable:$true] %s134_s8  ;;  %s137_s17 = int_to_ptr.vmem [resolvable:$true] %s136_s17 }
  0x19   : > { %p1314_p9 = pnand %p1040_p3, %p35_p5  ;;  %s125_s19 = scalar_lea.sflag [#allocation3], %s124_s30 }
  0x1a   : > { %s1112_s21 = sshra.s32 %s135_s8, 4  ;;  %s1119_s26 = scalar_lea.hbm %s1422_s0, 128  ;;  %s1113_s21 = int_to_ptr.hbm [resolvable:$true] %s1112_s21 }
  0x1b   : > { %s1114_s22 = scalar_lea.hbm %s1113_s21, 64  ;;  %p1116_p10 = pneg %p1314_p9 }
  0x1c   : > { %p1115_p2 = scmp.ne.s32.totalorder %s1113_s21, %s1114_s22  ;;  %p1120_p0 = scmp.lt.s32.totalorder %s1113_s21, %s1422_s0 }
  0x1d   : > { %p1121_p3 = scmp.lt.s32.totalorder %s1119_s26, %s1114_s22 }
  0x1e   : > { %p1117_p12 = pnand %p1116_p10, %p1115_p2 }
  0x1f   : > { %p1122_p5 = por %p1121_p3, %p1120_p0 }
  0x20   : > { %p1118_p13 = pneg %p1117_p12 }
  0x22   : > { %p1123_p11 = pnand %p1122_p5, %p1118_p13 }
  0x24   : > { %1126 = shalt.err (!%p1123_p11)
}
  0x25   : > { %s1217_s30 = smov 64   ;;  %s1218_s4 = smov 4  }
  0x26   : > { %1034 = dma.hbm_to_vmem [thread:$0]  (!%p1314_p9), %s135_s8, 1024, %s137_s17, %s125_s19, %s1217_s30, %s1217_s30, %s1218_s4  }
  0x27   : > { %148 = sbr.rel (%p1279_p8) target bundleno = 341 (0x155), region = 28  ;;  %s1331_s5 = sand.u32 (!%p1279_p8), 1, %s1204_s10  }
  0x28   : > { %s807_s6 = sshll.u32 (!%p1279_p8), %s1331_s5, 6  ;;  %s151_s7 = scalar_lea.sflag (!%p1279_p8), [#allocation3], %s1331_s5 }
  0x29   : > { %s1335_s14 = scalar_lea.vmem (!%p1279_p8), [#allocation2], %s807_s6 }
  0x2c   : > { %1187 = dma.done.wait (%p1266_p4), %s151_s7, 1024  }
  0x2d   : > { %1189 = vsyncadd (%p1266_p4), %s151_s7, 4294966272 }
  0x2e   : > { %1191 = dma.done.wait (%p40_p1), [#allocation6], 4096  }
  0x2f   : > { %1193 = vsyncadd (%p40_p1), [#allocation6], 4294963200  ;;  %v956_v0 = vld [vmem:[#allocation5 + $0xe0] sm:$0xf]  ;;  %v1015_v1 = vld [vmem:[#allocation5 + $0xec] sm:$0xf0] }
  0x30   : > { %v1013_v2 = vld [vmem:[#allocation5 + $0xe4] sm:$0xf]  ;;  %v957_v3 = vor.u32 %v1015_v1, %v956_v0  ;;  %v958_v4 = vld [vmem:[#allocation5 + $0xf0] sm:$0xf0]  ;;  %v964_v5 = vld [vmem:[#allocation5 + $0xe8] sm:$0xf] }
  0x31   : > { %v1016_v6 = vld [vmem:[#allocation5 + $0xf4] sm:$0xf0]  ;;  %v961_v7 = vor.u32 %v1013_v2, %v958_v4  ;;  %v1014_v9 = vld [vmem:[#allocation5 + $0xec] sm:$0xf]  ;;  %v966_v10 = vld [vmem:[#allocation5 + $0xf8] sm:$0xf0] }
  0x32   : > { %v965_v8 = vor.u32 %v1016_v6, %v964_v5  ;;  %v940_v11 = vld [vmem:[#allocation5 + $0xc0] sm:$0xf]  ;;  %439 = vmatpush.bf16.msra.mxu0 %v957_v3  ;;  %v969_v12 = vor.u32 %v1014_v9, %v966_v10  ;;  %v1011_v13 = vld [vmem:[#allocation5 + $0xcc] sm:$0xf0]  ;;  %v1009_v14 = vld [vmem:[#allocation5 + $0xc4] sm:$0xf] }
  0x33   : > { %v942_v15 = vld [vmem:[#allocation5 + $0xd0] sm:$0xf0]  ;;  %488 = vmatpush.bf16.msra.mxu1 %v961_v7  ;;  %v941_v16 = vor.u32 %v1011_v13, %v940_v11  ;;  %v948_v18 = vld [vmem:[#allocation5 + $0xc8] sm:$0xf]  ;;  %v1012_v19 = vld [vmem:[#allocation5 + $0xd4] sm:$0xf0] }
  0x34   : > { %537 = vmatpush.bf16.msra.mxu2 %v965_v8  ;;  %v945_v17 = vor.u32 %v1009_v14, %v942_v15  ;;  %v1010_v20 = vld [vmem:[#allocation5 + $0xcc] sm:$0xf]  ;;  %586 = vmatpush.bf16.msra.mxu3 %v969_v12  ;;  %v949_v21 = vor.u32 %v1012_v19, %v948_v18  ;;  %v950_v22 = vld [vmem:[#allocation5 + $0xd8] sm:$0xf0]  ;;  %v924_v23 = vld [vmem:[#allocation5 + $0xa0] sm:$0xf] }
  0x35   : > { %v1007_v24 = vld [vmem:[#allocation5 + $0xac] sm:$0xf0]  ;;  %v953_v25 = vor.u32 %v1010_v20, %v950_v22  ;;  %v1005_v26 = vld [vmem:[#allocation5 + $0xa4] sm:$0xf]  ;;  %v926_v27 = vld [vmem:[#allocation5 + $0xb0] sm:$0xf0] }
  0x36   : > { %v932_v28 = vld [vmem:[#allocation5 + $0xa8] sm:$0xf]  ;;  %440 = vmatpush.bf16.msra.mxu0 %v941_v16  ;;  %v925_v29 = vor.u32 %v1007_v24, %v924_v23  ;;  %v1008_v30 = vld [vmem:[#allocation5 + $0xb4] sm:$0xf0]  ;;  %v1006_v31 = vld [vmem:[#allocation5 + $0xac] sm:$0xf]  ;;  %v929_v33 = vor.u32 %v1005_v26, %v926_v27 }
  0x37   : > { %v934_v32 = vld [vmem:[#allocation5 + $0xb8] sm:$0xf0]  ;;  %489 = vmatpush.bf16.msra.mxu1 %v945_v17  ;;  %v933_v34 = vor.u32 %v1008_v30, %v932_v28  ;;  %v908_v35 = vld [vmem:[#allocation5 + $0x80] sm:$0xf]  ;;  %v1003_v36 = vld [vmem:[#allocation5 + $0x8c] sm:$0xf0] }
  0x38   : > { %538 = vmatpush.bf16.msra.mxu2 %v949_v21  ;;  %v1001_v37 = vld [vmem:[#allocation5 + $0x84] sm:$0xf]  ;;  %587 = vmatpush.bf16.msra.mxu3 %v953_v25  ;;  %v937_v38 = vor.u32 %v1006_v31, %v934_v32  ;;  %v910_v39 = vld [vmem:[#allocation5 + $0x90] sm:$0xf0]  ;;  %v916_v40 = vld [vmem:[#allocation5 + $0x88] sm:$0xf]  ;;  %v909_v44 = vor.u32 %v1003_v36, %v908_v35 }
  0x39   : > { %v1004_v41 = vld [vmem:[#allocation5 + $0x94] sm:$0xf0]  ;;  %v1002_v42 = vld [vmem:[#allocation5 + $0x8c] sm:$0xf]  ;;  %v918_v43 = vld [vmem:[#allocation5 + $0x98] sm:$0xf0]  ;;  %v913_v45 = vor.u32 %v1001_v37, %v910_v39 }
  0x3a   : > { %441 = vmatpush.bf16.msra.mxu0 %v925_v29  ;;  %v917_v46 = vor.u32 %v1004_v41, %v916_v40  ;;  %v892_v47 = vld [vmem:[#allocation5 + $0x60] sm:$0xf]  ;;  %v999_v48 = vld [vmem:[#allocation5 + $0x6c] sm:$0xf0]  ;;  %v997_v49 = vld [vmem:[#allocation5 + $0x64] sm:$0xf]  ;;  %v921_v50 = vor.u32 %v1002_v42, %v918_v43 }
  0x3b   : > { %490 = vmatpush.bf16.msra.mxu1 %v929_v33  ;;  %v894_v51 = vld [vmem:[#allocation5 + $0x70] sm:$0xf0]  ;;  %v900_v52 = vld [vmem:[#allocation5 + $0x68] sm:$0xf]  ;;  %v1000_v53 = vld [vmem:[#allocation5 + $0x74] sm:$0xf0]  ;;  %v893_v56 = vor.u32 %v999_v48, %v892_v47 }
  0x3c   : > { %539 = vmatpush.bf16.msra.mxu2 %v933_v34  ;;  %588 = vmatpush.bf16.msra.mxu3 %v937_v38  ;;  %v998_v54 = vld [vmem:[#allocation5 + $0x6c] sm:$0xf]  ;;  %v902_v55 = vld [vmem:[#allocation5 + $0x78] sm:$0xf0]  ;;  %v897_v57 = vor.u32 %v997_v49, %v894_v51  ;;  %v901_v58 = vor.u32 %v1000_v53, %v900_v52  ;;  %v876_v59 = vld [vmem:[#allocation5 + $0x40] sm:$0xf] }
  0x3d   : > { %v995_v60 = vld [vmem:[#allocation5 + $0x4c] sm:$0xf0]  ;;  %v993_v61 = vld [vmem:[#allocation5 + $0x44] sm:$0xf]  ;;  %v905_v62 = vor.u32 %v998_v54, %v902_v55  ;;  %v878_v63 = vld [vmem:[#allocation5 + $0x50] sm:$0xf0] }
  0x3e   : > { %442 = vmatpush.bf16.msra.mxu0 %v909_v44  ;;  %v884_v0 = vld [vmem:[#allocation5 + $0x48] sm:$0xf]  ;;  %v996_v1 = vld [vmem:[#allocation5 + $0x54] sm:$0xf0]  ;;  %v994_v2 = vld [vmem:[#allocation5 + $0x4c] sm:$0xf]  ;;  %v877_v4 = vor.u32 %v995_v60, %v876_v59  ;;  %v881_v5 = vor.u32 %v993_v61, %v878_v63 }
  0x3f   : > { %491 = vmatpush.bf16.msra.mxu1 %v913_v45  ;;  %v886_v3 = vld [vmem:[#allocation5 + $0x58] sm:$0xf0]  ;;  %v885_v6 = vor.u32 %v996_v1, %v884_v0  ;;  %v860_v7 = vld [vmem:[#allocation5 + $0x20] sm:$0xf]  ;;  %v991_v8 = vld [vmem:[#allocation5 + $0x2c] sm:$0xf0] }
  0x40   : > { %540 = vmatpush.bf16.msra.mxu2 %v917_v46  ;;  %589 = vmatpush.bf16.msra.mxu3 %v921_v50  ;;  %v989_v9 = vld [vmem:[#allocation5 + $0x24] sm:$0xf]  ;;  %v889_v10 = vor.u32 %v994_v2, %v886_v3  ;;  %v862_v11 = vld [vmem:[#allocation5 + $0x30] sm:$0xf0]  ;;  %v868_v12 = vld [vmem:[#allocation5 + $0x28] sm:$0xf]  ;;  %v861_v16 = vor.u32 %v991_v8, %v860_v7 }
  0x41   : > { %v992_v13 = vld [vmem:[#allocation5 + $0x34] sm:$0xf0]  ;;  %v990_v14 = vld [vmem:[#allocation5 + $0x2c] sm:$0xf]  ;;  %v870_v15 = vld [vmem:[#allocation5 + $0x38] sm:$0xf0]  ;;  %v865_v17 = vor.u32 %v989_v9, %v862_v11 }
  0x42   : > { %443 = vmatpush.bf16.msra.mxu0 %v893_v56  ;;  %v869_v18 = vor.u32 %v992_v13, %v868_v12  ;;  %v844_v19 = vld [vmem:[#allocation5] sm:$0xf]  ;;  %v987_v20 = vld [vmem:[#allocation5 + $0xc] sm:$0xf0]  ;;  %v985_v21 = vld [vmem:[#allocation5 + $0x4] sm:$0xf]  ;;  %v873_v22 = vor.u32 %v990_v14, %v870_v15 }
  0x43   : > { %492 = vmatpush.bf16.msra.mxu1 %v897_v57  ;;  %v846_v23 = vld [vmem:[#allocation5 + $0x10] sm:$0xf0]  ;;  %v852_v24 = vld [vmem:[#allocation5 + $0x8] sm:$0xf]  ;;  %v988_v25 = vld [vmem:[#allocation5 + $0x14] sm:$0xf0]  ;;  %v845_v28 = vor.u32 %v987_v20, %v844_v19 }
  0x44   : > { %541 = vmatpush.bf16.msra.mxu2 %v901_v58  ;;  %590 = vmatpush.bf16.msra.mxu3 %v905_v62  ;;  %v986_v26 = vld [vmem:[#allocation5 + $0xc] sm:$0xf]  ;;  %v854_v27 = vld [vmem:[#allocation5 + $0x18] sm:$0xf0]  ;;  %v849_v29 = vor.u32 %v985_v21, %v846_v23  ;;  %v853_v30 = vor.u32 %v988_v25, %v852_v24  ;;  %v977_v32 = vld [vmem:[%s1335_s14] sm:$0xff]  ;;  %s809_s15 = sshll.u32 %s1331_s5, 8 }
  0x45   : > { %v857_v31 = vor.u32 %v986_v26, %v854_v27  ;;  %v978_v33 = vld [vmem:[%s1335_s14 + $0x8] sm:$0xff]  ;;  %v979_v34 = vld [vmem:[%s1335_s14 + $0x10] sm:$0xff]  ;;  %v980_v35 = vld [vmem:[%s1335_s14 + $0x18] sm:$0xff]  ;;  %s1354_s20 = scalar_lea.vmem [#allocation7], %s809_s15  ;;  %s1018_s8 = sshll.u32 %s1257_s13, 8 }
  0x46   : > { %444 = vmatpush.bf16.msra.mxu0 %v877_v4  ;;  %v981_v36 = vld [vmem:[%s1335_s14 + $0x20] sm:$0xff]  ;;  %v982_v37 = vld [vmem:[%s1335_s14 + $0x28] sm:$0xff]  ;;  %v983_v38 = vld [vmem:[%s1335_s14 + $0x30] sm:$0xff]  ;;  %s712_s19 = scalar_lea.hbm %s1424_s2, %s1018_s8  ;;  %s713_s21 = sshll.u32 %s1354_s20, 4  ;;  %s714_s21 = int_to_ptr.vmem [resolvable:$true] %s713_s21 }
  0x47   : > { %493 = vmatpush.bf16.msra.mxu1 %v881_v5  ;;  %v984_v39 = vld [vmem:[%s1335_s14 + $0x38] sm:$0xff]  ;;  %s715_s22 = sshll.u32 %s712_s19, 4  ;;  %s700_s13 = scalar_lea.sflag [#allocation4], %s1331_s5  ;;  %s716_s22 = int_to_ptr.hbm [resolvable:$true] %s715_s22 }
  0x48   : > { %542 = vmatpush.bf16.msra.mxu2 %v885_v6  ;;  %591 = vmatpush.bf16.msra.mxu3 %v889_v10  ;;  %s1156_s24 = sshra.s32 %s716_s22, 4  ;;  %s1162_s3 = scalar_lea.hbm %s1424_s2, 512  ;;  %s1157_s24 = int_to_ptr.hbm [resolvable:$true] %s1156_s24 }
  0x49   : > { %s1158_s25 = scalar_lea.hbm %s1157_s24, 256  ;;  %p1163_p11 = scmp.lt.s32.totalorder %s1157_s24, %s1424_s2 }
  0x4a   : > { %445 = vmatpush.bf16.msra.mxu0 %v861_v16  ;;  %p1159_p1 = scmp.ne.s32.totalorder %s1157_s24, %s1158_s25  ;;  %p1164_p9 = scmp.lt.s32.totalorder %s1162_s3, %s1158_s25 }
  0x4b   : > { %494 = vmatpush.bf16.msra.mxu1 %v865_v17 }
  0x4c   : > { %543 = vmatpush.bf16.msra.mxu2 %v869_v18  ;;  %592 = vmatpush.bf16.msra.mxu3 %v873_v22  ;;  %p1160_p4 = pnand %p1159_p1, %p1303_p7  ;;  %p1165_p2 = por %p1164_p9, %p1163_p11 }
  0x4e   : > { %446 = vmatpush.bf16.msra.mxu0 %v845_v28  ;;  %p1161_p8 = pneg %p1160_p4 }
  0x4f   : > { %495 = vmatpush.bf16.msra.mxu1 %v849_v29 }
  0x50   : > { %544 = vmatpush.bf16.msra.mxu2 %v853_v30  ;;  %593 = vmatpush.bf16.msra.mxu3 %v857_v31  ;;  %p1166_p10 = pnand %p1165_p2, %p1161_p8 }
  0x51   : > { %447 = vmatmul.bf16.vlgmr.msra.gmra.mxu0 %v977_v32 }
  0x52   : > { %496 = vmatmul.bf16.vlgmr.msra.gmra.mxu1 %v977_v32 }
  0x53   : > { %545 = vmatmul.bf16.vlgmr.msra.gmra.mxu2 %v977_v32  ;;  %594 = vmatmul.bf16.vlgmr.msra.gmra.mxu3 %v977_v32 }
  0x61   : > { %452 = vmatmul.bf16.gmra.mxu0 %v978_v33 }
  0x62   : > { %501 = vmatmul.bf16.gmra.mxu1 %v978_v33 }
  0x63   : > { %550 = vmatmul.bf16.gmra.mxu2 %v978_v33  ;;  %599 = vmatmul.bf16.gmra.mxu3 %v978_v33 }
  0x71   : > { %457 = vmatmul.bf16.gmra.mxu0 %v979_v34 }
  0x72   : > { %506 = vmatmul.bf16.gmra.mxu1 %v979_v34 }
  0x73   : > { %555 = vmatmul.bf16.gmra.mxu2 %v979_v34  ;;  %604 = vmatmul.bf16.gmra.mxu3 %v979_v34 }
  0x81   : > { %462 = vmatmul.bf16.gmra.mxu0 %v980_v35 }
  0x82   : > { %511 = vmatmul.bf16.gmra.mxu1 %v980_v35 }
  0x83   : > { %560 = vmatmul.bf16.gmra.mxu2 %v980_v35  ;;  %609 = vmatmul.bf16.gmra.mxu3 %v980_v35 }
  0x91   : > { %467 = vmatmul.bf16.gmra.mxu0 %v981_v36 }
  0x92   : > { %516 = vmatmul.bf16.gmra.mxu1 %v981_v36 }
  0x93   : > { %565 = vmatmul.bf16.gmra.mxu2 %v981_v36  ;;  %614 = vmatmul.bf16.gmra.mxu3 %v981_v36 }
  0xa1   : > { %472 = vmatmul.bf16.gmra.mxu0 %v982_v37 }
  0xa2   : > { %521 = vmatmul.bf16.gmra.mxu1 %v982_v37 }
  0xa3   : > { %570 = vmatmul.bf16.gmra.mxu2 %v982_v37  ;;  %619 = vmatmul.bf16.gmra.mxu3 %v982_v37 }
  0xb1   : > { %477 = vmatmul.bf16.gmra.mxu0 %v983_v38 }
  0xb2   : > { %526 = vmatmul.bf16.gmra.mxu1 %v983_v38 }
  0xb3   : > { %575 = vmatmul.bf16.gmra.mxu2 %v983_v38  ;;  %624 = vmatmul.bf16.gmra.mxu3 %v983_v38 }
  0xc1   : > { %482 = vmatmul.bf16.gmra.mxu0 %v984_v39 }
  0xc2   : > { %531 = vmatmul.bf16.gmra.mxu1 %v984_v39 }
  0xc3   : > { %580 = vmatmul.bf16.gmra.mxu2 %v984_v39  ;;  %629 = vmatmul.bf16.gmra.mxu3 %v984_v39 }
  0xce   : > { %v448_v40 = vpop.f32.mrf.mxu0 }
  0xcf   : > { %v497_v41 = vpop.f32.mrf.mxu1 }
  0xd0   : > { %v635_v42 = vpack.c.bf16 %v497_v41, %v448_v40 }
  0xd2   : > { %667 = vst [vmem:[%s1354_s20] sm:$0xff] %v635_v42 }
  0xd6   : > { %v546_v43 = vpop.f32.mrf.mxu2  ;;  %v595_v44 = vpop.f32.mrf.mxu3 }
  0xd7   : > { %v450_v45 = vpop.f32.mrf.mxu0  ;;  %v636_v46 = vpack.c.bf16 %v595_v44, %v546_v43  ;;  %v499_v47 = vpop.f32.mrf.mxu1 }
  0xd8   : > { %v637_v48 = vpack.c.bf16 %v499_v47, %v450_v45 }
  0xd9   : > { %668 = vst [vmem:[%s1354_s20 + $0x8] sm:$0xff] %v636_v46 }
  0xda   : > { %669 = vst [vmem:[%s1354_s20 + $0x10] sm:$0xff] %v637_v48 }
  0xde   : > { %v548_v49 = vpop.f32.mrf.mxu2  ;;  %v597_v50 = vpop.f32.mrf.mxu3 }
  0xdf   : > { %v453_v51 = vpop.f32.mrf.mxu0  ;;  %v638_v52 = vpack.c.bf16 %v597_v50, %v548_v49  ;;  %v502_v53 = vpop.f32.mrf.mxu1 }
  0xe0   : > { %v639_v54 = vpack.c.bf16 %v502_v53, %v453_v51 }
  0xe1   : > { %670 = vst [vmem:[%s1354_s20 + $0x18] sm:$0xff] %v638_v52 }
  0xe2   : > { %671 = vst [vmem:[%s1354_s20 + $0x20] sm:$0xff] %v639_v54 }
  0xe6   : > { %v551_v55 = vpop.f32.mrf.mxu2  ;;  %v600_v56 = vpop.f32.mrf.mxu3 }
  0xe7   : > { %v455_v57 = vpop.f32.mrf.mxu0  ;;  %v640_v58 = vpack.c.bf16 %v600_v56, %v551_v55  ;;  %v504_v59 = vpop.f32.mrf.mxu1 }
  0xe8   : > { %v641_v60 = vpack.c.bf16 %v504_v59, %v455_v57 }
  0xe9   : > { %672 = vst [vmem:[%s1354_s20 + $0x28] sm:$0xff] %v640_v58 }
  0xea   : > { %673 = vst [vmem:[%s1354_s20 + $0x30] sm:$0xff] %v641_v60 }
  0xee   : > { %v553_v61 = vpop.f32.mrf.mxu2  ;;  %v602_v62 = vpop.f32.mrf.mxu3 }
  0xef   : > { %v458_v63 = vpop.f32.mrf.mxu0  ;;  %v642_v0 = vpack.c.bf16 %v602_v62, %v553_v61  ;;  %v507_v1 = vpop.f32.mrf.mxu1 }
  0xf0   : > { %v643_v2 = vpack.c.bf16 %v507_v1, %v458_v63 }
  0xf1   : > { %674 = vst [vmem:[%s1354_s20 + $0x38] sm:$0xff] %v642_v0 }
  0xf2   : > { %675 = vst [vmem:[%s1354_s20 + $0x40] sm:$0xff] %v643_v2 }
  0xf6   : > { %v556_v3 = vpop.f32.mrf.mxu2  ;;  %v605_v4 = vpop.f32.mrf.mxu3 }
  0xf7   : > { %v460_v5 = vpop.f32.mrf.mxu0  ;;  %v644_v6 = vpack.c.bf16 %v605_v4, %v556_v3  ;;  %v509_v7 = vpop.f32.mrf.mxu1 }
  0xf8   : > { %v645_v8 = vpack.c.bf16 %v509_v7, %v460_v5 }
  0xf9   : > { %676 = vst [vmem:[%s1354_s20 + $0x48] sm:$0xff] %v644_v6 }
  0xfa   : > { %677 = vst [vmem:[%s1354_s20 + $0x50] sm:$0xff] %v645_v8 }
  0xfe   : > { %v558_v9 = vpop.f32.mrf.mxu2  ;;  %v607_v10 = vpop.f32.mrf.mxu3 }
  0xff   : > { %v463_v11 = vpop.f32.mrf.mxu0  ;;  %v646_v12 = vpack.c.bf16 %v607_v10, %v558_v9  ;;  %v512_v13 = vpop.f32.mrf.mxu1 }
 0x100   : > { %v647_v14 = vpack.c.bf16 %v512_v13, %v463_v11 }
 0x101   : > { %678 = vst [vmem:[%s1354_s20 + $0x58] sm:$0xff] %v646_v12 }
 0x102   : > { %679 = vst [vmem:[%s1354_s20 + $0x60] sm:$0xff] %v647_v14 }
 0x106   : > { %v561_v15 = vpop.f32.mrf.mxu2  ;;  %v610_v16 = vpop.f32.mrf.mxu3 }
 0x107   : > { %v465_v17 = vpop.f32.mrf.mxu0  ;;  %v648_v18 = vpack.c.bf16 %v610_v16, %v561_v15  ;;  %v514_v19 = vpop.f32.mrf.mxu1 }
 0x108   : > { %v649_v20 = vpack.c.bf16 %v514_v19, %v465_v17 }
 0x109   : > { %680 = vst [vmem:[%s1354_s20 + $0x68] sm:$0xff] %v648_v18 }
 0x10a   : > { %681 = vst [vmem:[%s1354_s20 + $0x70] sm:$0xff] %v649_v20 }
 0x10e   : > { %v563_v21 = vpop.f32.mrf.mxu2  ;;  %v612_v22 = vpop.f32.mrf.mxu3 }
 0x10f   : > { %v468_v23 = vpop.f32.mrf.mxu0  ;;  %v650_v24 = vpack.c.bf16 %v612_v22, %v563_v21  ;;  %v517_v25 = vpop.f32.mrf.mxu1 }
 0x110   : > { %v651_v26 = vpack.c.bf16 %v517_v25, %v468_v23 }
 0x111   : > { %682 = vst [vmem:[%s1354_s20 + $0x78] sm:$0xff] %v650_v24 }
 0x112   : > { %683 = vst [vmem:[%s1354_s20 + $0x80] sm:$0xff] %v651_v26 }
 0x116   : > { %v566_v27 = vpop.f32.mrf.mxu2  ;;  %v615_v28 = vpop.f32.mrf.mxu3 }
 0x117   : > { %v470_v29 = vpop.f32.mrf.mxu0  ;;  %v652_v30 = vpack.c.bf16 %v615_v28, %v566_v27  ;;  %v519_v31 = vpop.f32.mrf.mxu1 }
 0x118   : > { %v653_v32 = vpack.c.bf16 %v519_v31, %v470_v29 }
 0x119   : > { %684 = vst [vmem:[%s1354_s20 + $0x88] sm:$0xff] %v652_v30 }
 0x11a   : > { %685 = vst [vmem:[%s1354_s20 + $0x90] sm:$0xff] %v653_v32 }
 0x11e   : > { %v568_v33 = vpop.f32.mrf.mxu2  ;;  %v617_v34 = vpop.f32.mrf.mxu3 }
 0x11f   : > { %v473_v35 = vpop.f32.mrf.mxu0  ;;  %v654_v36 = vpack.c.bf16 %v617_v34, %v568_v33  ;;  %v522_v37 = vpop.f32.mrf.mxu1 }
 0x120   : > { %v655_v38 = vpack.c.bf16 %v522_v37, %v473_v35 }
 0x121   : > { %686 = vst [vmem:[%s1354_s20 + $0x98] sm:$0xff] %v654_v36 }
 0x122   : > { %687 = vst [vmem:[%s1354_s20 + $0xa0] sm:$0xff] %v655_v38 }
 0x126   : > { %v571_v39 = vpop.f32.mrf.mxu2  ;;  %v620_v40 = vpop.f32.mrf.mxu3 }
 0x127   : > { %v475_v41 = vpop.f32.mrf.mxu0  ;;  %v656_v42 = vpack.c.bf16 %v620_v40, %v571_v39  ;;  %v524_v43 = vpop.f32.mrf.mxu1 }
 0x128   : > { %v657_v44 = vpack.c.bf16 %v524_v43, %v475_v41 }
 0x129   : > { %688 = vst [vmem:[%s1354_s20 + $0xa8] sm:$0xff] %v656_v42 }
 0x12a   : > { %689 = vst [vmem:[%s1354_s20 + $0xb0] sm:$0xff] %v657_v44 }
 0x12e   : > { %v573_v45 = vpop.f32.mrf.mxu2  ;;  %v622_v46 = vpop.f32.mrf.mxu3 }
 0x12f   : > { %v478_v47 = vpop.f32.mrf.mxu0  ;;  %v658_v48 = vpack.c.bf16 %v622_v46, %v573_v45  ;;  %v527_v49 = vpop.f32.mrf.mxu1 }
 0x130   : > { %v659_v50 = vpack.c.bf16 %v527_v49, %v478_v47 }
 0x131   : > { %690 = vst [vmem:[%s1354_s20 + $0xb8] sm:$0xff] %v658_v48 }
 0x132   : > { %691 = vst [vmem:[%s1354_s20 + $0xc0] sm:$0xff] %v659_v50 }
 0x136   : > { %v576_v51 = vpop.f32.mrf.mxu2  ;;  %v625_v52 = vpop.f32.mrf.mxu3 }
 0x137   : > { %v480_v53 = vpop.f32.mrf.mxu0  ;;  %v660_v54 = vpack.c.bf16 %v625_v52, %v576_v51  ;;  %v529_v55 = vpop.f32.mrf.mxu1 }
 0x138   : > { %v661_v56 = vpack.c.bf16 %v529_v55, %v480_v53 }
 0x139   : > { %692 = vst [vmem:[%s1354_s20 + $0xc8] sm:$0xff] %v660_v54 }
 0x13a   : > { %693 = vst [vmem:[%s1354_s20 + $0xd0] sm:$0xff] %v661_v56 }
 0x13e   : > { %v578_v57 = vpop.f32.mrf.mxu2  ;;  %v627_v58 = vpop.f32.mrf.mxu3 }
 0x13f   : > { %v483_v59 = vpop.f32.mrf.mxu0  ;;  %v662_v60 = vpack.c.bf16 %v627_v58, %v578_v57  ;;  %v532_v61 = vpop.f32.mrf.mxu1 }
 0x140   : > { %v663_v62 = vpack.c.bf16 %v532_v61, %v483_v59 }
 0x141   : > { %694 = vst [vmem:[%s1354_s20 + $0xd8] sm:$0xff] %v662_v60 }
 0x142   : > { %695 = vst [vmem:[%s1354_s20 + $0xe0] sm:$0xff] %v663_v62 }
 0x146   : > { %v581_v63 = vpop.f32.mrf.mxu2  ;;  %v630_v0 = vpop.f32.mrf.mxu3 }
 0x147   : > { %v485_v1 = vpop.f32.mrf.mxu0  ;;  %v664_v2 = vpack.c.bf16 %v630_v0, %v581_v63  ;;  %v534_v3 = vpop.f32.mrf.mxu1 }
 0x148   : > { %v665_v4 = vpack.c.bf16 %v534_v3, %v485_v1 }
 0x149   : > { %696 = vst [vmem:[%s1354_s20 + $0xe8] sm:$0xff] %v664_v2 }
 0x14a   : > { %697 = vst [vmem:[%s1354_s20 + $0xf0] sm:$0xff] %v665_v4 }
 0x14e   : > { %v583_v5 = vpop.f32.mrf.mxu2  ;;  %v632_v6 = vpop.f32.mrf.mxu3 }
 0x14f   : > { %v666_v7 = vpack.c.bf16 %v632_v6, %v583_v5 }
 0x151   : > { %698 = vst [vmem:[%s1354_s20 + $0xf8] sm:$0xff] %v666_v7 }
 0x152   : > { %1169 = shalt.err (!%p1166_p10)
}
 0x153   : > { %s1219_s5 = smov 256   ;;  %s1220_s6 = smov 16  }
 0x154   : > { %1025 = dma.vmem_to_hbm [thread:$0]  (%p1303_p7), %s714_s21, 4096, %s716_s22, %s700_s13, %s1219_s5, %s1219_s5, %s1220_s6  }
 0x155 PF: > { %s730_s7 = sand.u32 1, %s1200_s9   ;;  %p1430_p12 = scmp.ge.s32.totalorder %s1212_s12, 2 }
 0x156   : > { %s731_s14 = scalar_lea.sflag [#allocation4], %s730_s7 }
 0x157   : > { %p1036_p13 = pnand %p1430_p12, %p1271_p6 }
 0x159   : > { %p1037_p0 = pneg %p1036_p13 }
 0x15b   : > { %1195 = dma.done.wait (%p1037_p0), %s731_s14, 4096  }
 0x15c   : > { %1197 = vsyncadd (%p1037_p0), %s731_s14, 4294963200  ;;  %p16_p3 = scmp.ge.s32.totalorder %s1289_s23, 4   ;;  %s1431_s9 = smov %s1204_s10 }
 0x15d   : > { %s1432_s10 = smov %s1208_s11  ;;  %s1433_s11 = smov %s1299_s28 }
 0x15e   : > { %s1434_s12 = smov %s1289_s23  ;;  %18 = sbr.rel (!%p16_p3) target bundleno = 6 (0x6), region = 77 }
 0x163   :  { %737 = vsyncpa [#allocation3], 1 }
 0x164   :  { %739 = vsyncpa [#allocation3 + $0x1], 1 }
 0x165   :  { %740 = vsyncpa [#allocation6], 1 }
 0x166   :  { %741 = vsyncpa [#allocation4], 1 }
 0x167   :  { %743 = vsyncpa [#allocation4 + $0x1], 1 }

</bundles_post_ra>
